<compile_context>
chip_gen: v5e
topology: v5e:2x2
jax: 0.10.0
libtpu: 0.0.40
codegen_flags: <defaults>
</compile_context>

<pallas_src>
import numpy as np
import jax
import jax.numpy as jnp
from jax.experimental import pallas as pl
from jax.experimental.pallas import tpu as pltpu


# ----------------------------------------------------------------------------
# Icosahedron geometry + neighbor matrix construction (host-side numpy).
# Faithful port of get_neighbors / sort_neighbors / sort_rotation /
# get_mat_neighbors from the PyTorch module.  Runs once, at setup time.
# ----------------------------------------------------------------------------
def build_icosahedron():
    phi = (1.0 + 5.0 ** 0.5) / 2.0
    verts = np.array(
        [
            [-1.0, phi, 0.0], [1.0, phi, 0.0], [-1.0, -phi, 0.0], [1.0, -phi, 0.0],
            [0.0, -1.0, phi], [0.0, 1.0, phi], [0.0, -1.0, -phi], [0.0, 1.0, -phi],
            [phi, 0.0, -1.0], [phi, 0.0, 1.0], [-phi, 0.0, -1.0], [-phi, 0.0, 1.0],
        ],
        dtype=np.float64,
    )
    edges = []
    for i in range(12):
        for j in range(i + 1, 12):
            d2 = float(np.sum((verts[i] - verts[j]) ** 2))
            if abs(d2 - 4.0) < 1e-6:  # edge length is 2.0 for these coords
                edges.append([i, j])
    return verts, edges


def get_neighbors(list_edges, nbr_vert):
    neighbors = [[] for _ in range(nbr_vert)]
    for v1, v2 in list_edges:
        neighbors[v1].append(v2)
        neighbors[v2].append(v1)
    return neighbors


def sort_neighbors(list_neighbors, nbr_vert):
    new_neighbors = [[] for _ in range(nbr_vert)]
    for i in range(nbr_vert):
        neighbors = list_neighbors[i].copy()
        vert = neighbors[0]
        new_neighbors[i].append(vert)
        neighbors.remove(vert)
        while len(neighbors) != 0:
            common = list(set(neighbors).intersection(list_neighbors[vert]))
            vert = common[0]
            new_neighbors[i].append(vert)
            neighbors.remove(vert)
    return new_neighbors


def sort_rotation(verts, list_neighbors, nbr_vert):
    new_neighbors = [[] for _ in range(nbr_vert)]
    for i in range(nbr_vert):
        p0 = verts[i]
        p1 = verts[list_neighbors[i][0]]
        p2 = verts[list_neighbors[i][1]]
        v1 = p1 - p0
        v2 = p2 - p1
        vn = np.cross(v1, v2)
        n = vn / np.linalg.norm(vn)
        milieu = p1 + v2 / 2.0
        v3 = milieu - p0
        cg = p0 + 2.0 * v3 / 3.0
        if np.dot(n, cg) > 1.0:
            new_neighbors[i] = list_neighbors[i]
        else:
            list_neighbors[i].reverse()
            new_neighbors[i] = list_neighbors[i]
    return new_neighbors


def get_mat_neighbors(list_neighbors, nbr_vert):
    # (nbr_vert, nbr_vert*9): column group index_cam*9 holds [self, n1..n5, 0,0,0]
    mat = np.zeros((nbr_vert, nbr_vert * 9), dtype=np.float32)
    for index_cam in range(nbr_vert):
        mat[index_cam, index_cam * 9] = 1.0
        for k in range(len(list_neighbors[index_cam])):
            mat[list_neighbors[index_cam][k], index_cam * 9 + k + 1] = 1.0
    return mat


def make_mat_neighbors():
    verts, edges = build_icosahedron()
    nbr_vert = int(np.max(np.array(edges)) + 1)  # 12
    neigh = get_neighbors(edges, nbr_vert)
    neigh = sort_neighbors(neigh, nbr_vert)
    neigh = sort_rotation(verts, neigh, nbr_vert)
    return get_mat_neighbors(neigh, nbr_vert), nbr_vert


# ----------------------------------------------------------------------------
# Helpers
# ----------------------------------------------------------------------------
def _round_up(v, m):
    return ((v + m - 1) // m) * m


def _physical_vmem_bytes():
    try:
        return int(pltpu.get_tpu_info().vmem_capacity_bytes)
    except Exception:
        return 64 * 1024 * 1024  # v7x-safe fallback (smallest current VMEM)


# ----------------------------------------------------------------------------
# Pallas kernel: one fused matmul + bias.  x is read as f32 and cast to bf16
# on-chip (VPU cast is free under the DMA bottleneck); MXU accumulates in f32.
# ----------------------------------------------------------------------------
def _fused_matmul_bias_kernel(x_ref, w_ref, b_ref, o_ref):
    x_bf = x_ref[...].astype(jnp.bfloat16)
    acc = jnp.dot(x_bf, w_ref[...], preferred_element_type=jnp.float32)
    o_ref[...] = acc + b_ref[...]          # (1, tile_n) f32 bias row broadcast


def prepare_icosahedron_conv_weights(mat_neighbors, conv_weight, conv_bias,
                                     *, compute_dtype=jnp.bfloat16):
    """Fold the neighbor gather into the conv weight.

    Depends only on the conv parameters -> hoist / cache across calls when the
    weights are static between steps.
    """
    nbr_cam = mat_neighbors.shape[0]
    O, F = conv_weight.shape[0], conv_weight.shape[1]
    mat3 = mat_neighbors.astype(jnp.float32).reshape(nbr_cam, nbr_cam, 9)  # (c_in, cam, k)
    w3 = conv_weight.astype(jnp.float32).reshape(O, F, 9)                  # (o, f, k)
    # W_eff[(c_in, f), (cam, o)]
    w_eff = jnp.einsum("cmk,ofk->cfmo", mat3, w3).reshape(nbr_cam * F, nbr_cam * O)
    bias_row = jnp.tile(conv_bias.astype(jnp.float32), nbr_cam).reshape(1, nbr_cam * O)
    return w_eff.astype(compute_dtype), bias_row


def _build_call(M, K, N, out_dtype, *, tile_m, tile_n, grid_m, grid_n,
                vmem_limit, single_buffer_constants):
    def const_spec(shape, index_map):
        if single_buffer_constants:
            # Constant-index operands are DMA'd once; single-buffering halves
            # their resident VMEM footprint.
            return pl.BlockSpec(shape, index_map, pipeline_mode=pl.Buffered(1))
        return pl.BlockSpec(shape, index_map)

    grid_spec = pltpu.PrefetchScalarGridSpec(
        num_scalar_prefetch=0,
        grid=(grid_m, grid_n),
        in_specs=[
            pl.BlockSpec((tile_m, K), lambda i, j: (i, 0)),   # activations (contiguous DMA)
            const_spec((K, tile_n), lambda i, j: (0, j)),     # (resident) W_eff
            const_spec((1, tile_n), lambda i, j: (0, j)),     # bias row
        ],
        out_specs=pl.BlockSpec((tile_m, tile_n), lambda i, j: (i, j)),
    )
    return pl.pallas_call(
        _fused_matmul_bias_kernel,
        out_shape=jax.ShapeDtypeStruct((M, N), out_dtype),
        grid_spec=grid_spec,
        compiler_params=pltpu.CompilerParams(
            dimension_semantics=("parallel", "arbitrary"),
            vmem_limit_bytes=vmem_limit,
        ),
    )


def icosahedron_conv2d_forward(x, mat_neighbors, conv_weight, conv_bias,
                               *, compute_dtype=jnp.bfloat16, max_tile_m=4096):
    """x: (B, 12, F) f32; conv_weight: (O, F, 3, 3); conv_bias: (O,) -> (B, 12, O) f32."""
    B, nbr_cam, F = x.shape
    assert nbr_cam == 12, "IcosahedronConv2d requires nbr_cam == 12"
    O = conv_weight.shape[0]
    K = nbr_cam * F          # contraction over the ORIGINAL (cam, feature) order of x
    N = nbr_cam * O

    w_eff, bias_row = prepare_icosahedron_conv_weights(
        mat_neighbors, conv_weight, conv_bias, compute_dtype=compute_dtype)

    phys_vmem = _physical_vmem_bytes()
    in_itemsize = np.dtype(compute_dtype).itemsize

    # ---- N tiling: keep W_eff fully resident when it fits comfortably; otherwise
    #      tile the output-column axis (guards large F*O on v7x's 64 MiB VMEM). ----
    weight_budget = max(phys_vmem // 4, 8 * 1024 * 1024)
    if K * _round_up(N, 128) * in_itemsize <= weight_budget:
        tile_n, grid_n = N, 1            # full last dim -> legal, loaded once
    else:
        tile_n = max(128, (weight_budget // (2 * K * in_itemsize)) // 128 * 128)
        tile_n = min(tile_n, _round_up(N, 128))
        grid_n = pl.cdiv(N, tile_n)

    # ---- M tiling: as large as VMEM allows (amortizes ~0.35 us per grid step),
    #      capped so grid_m >= 2 whenever B allows (v7x dual-TensorCore). ----
    k_lanes = _round_up(K, 128)          # VMEM lane padding of the x block
    n_lanes = _round_up(tile_n, 128)     # VMEM lane padding of the out block
    w_bufs = 1 if grid_n == 1 else 2
    w_vmem = w_bufs * (_round_up(K, 8) * n_lanes * in_itemsize + 8 * n_lanes * 4)
    per_row = 2 * k_lanes * 4 + 2 * n_lanes * 4        # double-buffered f32 in/out rows
    stream_budget = max(phys_vmem // 3 - w_vmem, 2 * 1024 * 1024)
    tile_m = max(8, min(max_tile_m, (stream_budget // per_row) // 8 * 8))
    tile_m = min(tile_m, _round_up(pl.cdiv(B, 2), 8))
    grid_m = pl.cdiv(B, tile_m)          # ragged last block is masked by Pallas

    vmem_est = tile_m * per_row + w_vmem
    vmem_cap = min((phys_vmem * 3) // 4, 96 * 1024 * 1024)   # <=48 MiB on v7x, <=96 MiB on v5e/v6e
    vmem_limit = int(min(max(2 * vmem_est, 16 * 1024 * 1024), vmem_cap))

    x2 = x.reshape(B, K)                 # no pad, no host-side cast, no copy

    call_kwargs = dict(tile_m=tile_m, tile_n=tile_n, grid_m=grid_m, grid_n=grid_n,
                       vmem_limit=vmem_limit)
    try:
        out2 = _build_call(B, K, N, jnp.float32,
                           single_buffer_constants=(grid_n == 1),
                           **call_kwargs)(x2, w_eff, bias_row)
    except Exception:
        # Fallback for environments without BlockSpec pipeline_mode support.
        out2 = _build_call(B, K, N, jnp.float32,
                           single_buffer_constants=False,
                           **call_kwargs)(x2, w_eff, bias_row)

    return out2.reshape(B, nbr_cam, O)   # unpadded -> reshape is free


# ----------------------------------------------------------------------------
# Main
# ----------------------------------------------------------------------------
if __name__ == "__main__":
    batch = 2
    nbr_cam = 12          # icosahedron vertices
    nbr_features = 8      # conv in_channels
    out_channels = 4      # conv out_channels

    mat_np, nbr_vert = make_mat_neighbors()
    assert nbr_vert == nbr_cam
    mat_neighbors = jnp.asarray(mat_np, dtype=jnp.float32)

    key = jax.random.PRNGKey(0)
    kx, kw, kb = jax.random.split(key, 3)
    x = jax.random.normal(kx, (batch, nbr_cam, nbr_features), dtype=jnp.float32)
    conv_weight = jax.random.normal(
        kw, (out_channels, nbr_features, 3, 3), dtype=jnp.float32) * 0.1
    conv_bias = jax.random.normal(kb, (out_channels,), dtype=jnp.float32) * 0.1

    out = icosahedron_conv2d_forward(x, mat_neighbors, conv_weight, conv_bias)
    out = jax.block_until_ready(out)
    assert out.shape == (batch, nbr_cam, out_channels)

    # --- Reference 1: exact PyTorch forward path in f32 (looser tol, since the
    #     kernel computes in bf16 with f32 accumulation). ---
    x2 = jnp.transpose(x, (0, 2, 1)).reshape(batch * nbr_features, nbr_cam)
    ref = x2[:, :12] @ mat_neighbors
    ref = ref.reshape(batch, nbr_features, nbr_cam, 3, 3).transpose(0, 2, 1, 3, 4)
    ref = ref.reshape(batch * nbr_cam, nbr_features * 9)
    ref = ref @ conv_weight.reshape(out_channels, -1).T + conv_bias
    ref_f32 = ref.reshape(batch, nbr_cam, out_channels)

    # --- Reference 2: same bf16-input / f32-accumulate math as the kernel
    #     (tight tol; differences are only f32 summation order). ---
    mat3 = mat_neighbors.reshape(nbr_cam, nbr_cam, 9)
    w3 = conv_weight.reshape(out_channels, nbr_features, 9)
    w_eff = jnp.einsum("cmk,ofk->cfmo", mat3, w3).reshape(
        nbr_cam * nbr_features, nbr_cam * out_channels)
    ref_b = jnp.dot(x.reshape(batch, -1).astype(jnp.bfloat16),
                    w_eff.astype(jnp.bfloat16),
                    preferred_element_type=jnp.float32)
    ref_b = ref_b + jnp.tile(conv_bias, nbr_cam)[None, :]
    ref_bf16 = ref_b.reshape(batch, nbr_cam, out_channels)

    assert jnp.allclose(out, ref_bf16, atol=2e-4, rtol=2e-4), "mismatch vs bf16 reference"
    assert jnp.allclose(out, ref_f32, atol=5e-2, rtol=5e-2), "mismatch vs f32 reference"

    print("KERNEL_OK")
</pallas_src>

<mosaic_0001>
module attributes {stable_mosaic.version = 11 : i64} {
  func.func @_fused_matmul_bias_kernel(%arg0: i32, %arg1: i32, %arg2: memref<8x96xf32, #tpu.memory_space<vmem>>, %arg3: memref<96x48xbf16, #tpu.memory_space<vmem>>, %arg4: memref<1x48xf32, #tpu.memory_space<vmem>>, %arg5: memref<8x48xf32, #tpu.memory_space<vmem>>) attributes {dimension_semantics = [#tpu.dimension_semantics<parallel>, #tpu.dimension_semantics<arbitrary>], iteration_bounds = array<i64: 1, 1>, scalar_prefetch = 0 : i64, scratch_operands = 0 : i64, tpu.core_type = #tpu.core_type<tc>, window_params = [{transform_indices = @transform_0, window_bounds = array<i64: 8, 96>}, {pipeline_mode = #tpu.pipeline_mode<synchronous>, transform_indices = @transform_1, window_bounds = array<i64: 96, 48>}, {pipeline_mode = #tpu.pipeline_mode<synchronous>, transform_indices = @transform_2, window_bounds = array<i64: 1, 48>}, {transform_indices = @transform_3, window_bounds = array<i64: 8, 48>}]} {
    %c0 = arith.constant 0 : index
    %c0_0 = arith.constant 0 : index
    %0 = vector.load %arg2[%c0, %c0_0] : memref<8x96xf32, #tpu.memory_space<vmem>>, vector<8x96xf32>
    %1 = arith.truncf %0 : vector<8x96xf32> to vector<8x96xbf16>
    %c0_1 = arith.constant 0 : index
    %c0_2 = arith.constant 0 : index
    %2 = vector.load %arg3[%c0_1, %c0_2] : memref<96x48xbf16, #tpu.memory_space<vmem>>, vector<96x48xbf16>
    %cst = arith.constant dense<0.000000e+00> : vector<8x48xf32>
    %3 = tpu.matmul %1, %2, %cst {dimension_numbers = #tpu.dot_dimension_numbers<[1], [0], [0], [1], [0, 0, 1, 1], [], []>} : vector<8x96xbf16>, vector<96x48xbf16>, vector<8x48xf32> -> vector<8x48xf32>
    %c0_3 = arith.constant 0 : index
    %c0_4 = arith.constant 0 : index
    %4 = vector.load %arg4[%c0_3, %c0_4] : memref<1x48xf32, #tpu.memory_space<vmem>>, vector<1x48xf32>
    %5 = vector.broadcast %4 : vector<1x48xf32> to vector<8x48xf32>
    %6 = arith.addf %3, %5 : vector<8x48xf32>
    %c0_5 = arith.constant 0 : index
    %c0_6 = arith.constant 0 : index
    %7 = vector.load %arg5[%c0_5, %c0_6] : memref<8x48xf32, #tpu.memory_space<vmem>>, vector<8x48xf32>
    tpu.vector_store %arg5[%c0_5, %c0_6], %6 {strides = array<i32>} : memref<8x48xf32, #tpu.memory_space<vmem>>, vector<8x48xf32>,
    return
  }
  func.func @transform_0(%arg0: i32, %arg1: i32) -> (i32, i32) {
    %c0_i32 = arith.constant 0 : i32
    %c0_i32_0 = arith.constant 0 : i32
    return %arg0, %c0_i32 : i32, i32
  }
  func.func @transform_1(%arg0: i32, %arg1: i32) -> (i32, i32) {
    %c0_i32 = arith.constant 0 : i32
    %c0_i32_0 = arith.constant 0 : i32
    return %c0_i32, %arg1 : i32, i32
  }
  func.func @transform_2(%arg0: i32, %arg1: i32) -> (i32, i32) {
    %c0_i32 = arith.constant 0 : i32
    %c0_i32_0 = arith.constant 0 : i32
    return %c0_i32, %arg1 : i32, i32
  }
  func.func @transform_3(%arg0: i32, %arg1: i32) -> (i32, i32) {
    %c0_i32 = arith.constant 0 : i32
    return %arg0, %arg1 : i32, i32
  }
}

module attributes {stable_mosaic.version = 11 : i64} {
  func.func @_fused_matmul_bias_kernel(%arg0: i32, %arg1: i32, %arg2: memref<8x96xf32, #tpu.memory_space<vmem>>, %arg3: memref<96x48xbf16, #tpu.memory_space<vmem>>, %arg4: memref<1x48xf32, #tpu.memory_space<vmem>>, %arg5: memref<8x48xf32, #tpu.memory_space<vmem>>) attributes {dimension_semantics = [#tpu.dimension_semantics<parallel>, #tpu.dimension_semantics<arbitrary>], iteration_bounds = array<i64: 1, 1>, scalar_prefetch = 0 : i64, scratch_operands = 0 : i64, tpu.core_type = #tpu.core_type<tc>, window_params = [{transform_indices = @transform_0, window_bounds = array<i64: 8, 96>}, {transform_indices = @transform_1, window_bounds = array<i64: 96, 48>}, {transform_indices = @transform_2, window_bounds = array<i64: 1, 48>}, {transform_indices = @transform_3, window_bounds = array<i64: 8, 48>}]} {
    %c0 = arith.constant 0 : index
    %c0_0 = arith.constant 0 : index
    %0 = vector.load %arg2[%c0, %c0_0] : memref<8x96xf32, #tpu.memory_space<vmem>>, vector<8x96xf32>
    %1 = arith.truncf %0 : vector<8x96xf32> to vector<8x96xbf16>
    %c0_1 = arith.constant 0 : index
    %c0_2 = arith.constant 0 : index
    %2 = vector.load %arg3[%c0_1, %c0_2] : memref<96x48xbf16, #tpu.memory_space<vmem>>, vector<96x48xbf16>
    %cst = arith.constant dense<0.000000e+00> : vector<8x48xf32>
    %3 = tpu.matmul %1, %2, %cst {dimension_numbers = #tpu.dot_dimension_numbers<[1], [0], [0], [1], [0, 0, 1, 1], [], []>} : vector<8x96xbf16>, vector<96x48xbf16>, vector<8x48xf32> -> vector<8x48xf32>
    %c0_3 = arith.constant 0 : index
    %c0_4 = arith.constant 0 : index
    %4 = vector.load %arg4[%c0_3, %c0_4] : memref<1x48xf32, #tpu.memory_space<vmem>>, vector<1x48xf32>
    %5 = vector.broadcast %4 : vector<1x48xf32> to vector<8x48xf32>
    %6 = arith.addf %3, %5 : vector<8x48xf32>
    %c0_5 = arith.constant 0 : index
    %c0_6 = arith.constant 0 : index
    %7 = vector.load %arg5[%c0_5, %c0_6] : memref<8x48xf32, #tpu.memory_space<vmem>>, vector<8x48xf32>
    tpu.vector_store %arg5[%c0_5, %c0_6], %6 {strides = array<i32>} : memref<8x48xf32, #tpu.memory_space<vmem>>, vector<8x48xf32>,
    return
  }
  func.func @transform_0(%arg0: i32, %arg1: i32) -> (i32, i32) {
    %c0_i32 = arith.constant 0 : i32
    %c0_i32_0 = arith.constant 0 : i32
    return %arg0, %c0_i32 : i32, i32
  }
  func.func @transform_1(%arg0: i32, %arg1: i32) -> (i32, i32) {
    %c0_i32 = arith.constant 0 : i32
    %c0_i32_0 = arith.constant 0 : i32
    return %c0_i32, %arg1 : i32, i32
  }
  func.func @transform_2(%arg0: i32, %arg1: i32) -> (i32, i32) {
    %c0_i32 = arith.constant 0 : i32
    %c0_i32_0 = arith.constant 0 : i32
    return %c0_i32, %arg1 : i32, i32
  }
  func.func @transform_3(%arg0: i32, %arg1: i32) -> (i32, i32) {
    %c0_i32 = arith.constant 0 : i32
    return %arg0, %arg1 : i32, i32
  }
}

</mosaic_0001>

<bundles_post_ra>
// kernel: tpu_custom_call.1
= control target key start
LH: loop header
LB: loop body
LE: loop exit
PB: predicated region body
PF: predicated region fallthrough
CT: control target
= control target key end

     0   :  { %8 = vsyncpa [#allocation3], 0  ;;  %vm70_vm0 = vcmask 785408   ;;  %vm87_vm1 = vcmask 392192   ;;  %s218_s0 = inlined_call_operand.vmem [shape: f32[2,96], index: 0, kind: input, shape index: {}]   ;;  %s219_s1 = inlined_call_operand.vmem [shape: bf16[96,48], index: 1, kind: input, shape index: {}]   ;;  %s220_s2 = inlined_call_operand.vmem [shape: f32[1,48], index: 2, kind: input, shape index: {}]   ;;  %s221_s3 = inlined_call_operand.hbm [shape: f32[2,48], index: 3, kind: output, shape index: {}]  }
   0x1   :  { %v137_v0 = vld [vmem:[%s219_s1 + $0x28] sm:$0xff]  ;;  %v136_v1 = vld [vmem:[%s219_s1 + $0x20] sm:$0xff]  ;;  %v135_v2 = vld [vmem:[%s219_s1 + $0x18] sm:$0xff] }
   0x2   :  { %76 = vmatpush.bf16.msra.mxu0 %v137_v0  ;;  %v134_v3 = vld [vmem:[%s219_s1 + $0x10] sm:$0xff]  ;;  %v133_v4 = vld [vmem:[%s219_s1 + $0x8] sm:$0xff]  ;;  %v132_v5 = vld [vmem:[%s219_s1] sm:$0xff] }
   0x3   :  { %v16_v6 = vld [vmem:[%s218_s0] sm:$0xff] }
   0x4   :  { %v17_v7 = vpack.c.bf16 %v16_v6, %v16_v6  ;;  %v141_v8 = vld [vmem:[%s220_s2] ss:$0 sm:$0xff] }
   0x6   :  { %77 = vmatpush.bf16.msra.mxu0 %v136_v1 }
   0xa   :  { %78 = vmatpush.bf16.msra.mxu0 %v135_v2 }
   0xe   :  { %79 = vmatpush.bf16.msra.mxu0 %v134_v3 }
  0x12   :  { %80 = vmatpush.bf16.msra.mxu0 %v133_v4 }
  0x16   :  { %81 = vmatpush.bf16.msra.mxu0 %v132_v5 }
  0x19   :  { %131 = vmatmul.msk.bf16.vlgmr.msra.gmra.mxu0 %vm70_vm0, %v17_v7 }
  0x96   :  { %v83_v9 = vpop.f32.mrf.mxu0 }
  0x97   :  { %v84_v10 = vadd.f32 %v141_v8, %v83_v9 }
  0x99   :  { %88 = vst.msk [vmem:[#allocation2] sm:$0xff] %vm87_vm1, %v84_v10 }
  0x9e   :  { %v85_v11 = vpop.f32.mrf.mxu0 }
  0x9f   :  { %92 = vsyncadd [#allocation3], 96  ;;  %s95_s29 = sshll.u32 %s221_s3, 4  ;;  %s168_s30 = smov [#allocation2]   ;;  %s96_s29 = int_to_ptr.hbm [resolvable:$true] %s95_s29 }
  0xa0   :  { %s93_s0 = sshll.u32 %s168_s30, 4  ;;  %s169_s4 = smov 32   ;;  %s94_s0 = int_to_ptr.vmem [resolvable:$true] %s93_s0 }
  0xa1   :  { %s170_s5 = smov 2  }
  0xa2   :  { %101 = dma.vmem_to_hbm [thread:$0]  %s94_s0, 32, %s96_s29, [#allocation3], %s169_s4, %s169_s4, %s170_s5  }
  0xa3   :  { %166 = dma.done.wait [#allocation3], 128  }
  0xa4   :  { %167 = vsyncadd [#allocation3], 4294967168 }
  0xa5   :  { %106 = vsyncpa [#allocation3], 1 }

// kernel: tpu_custom_call.1
= control target key start
LH: loop header
LB: loop body
LE: loop exit
PB: predicated region body
PF: predicated region fallthrough
CT: control target
= control target key end

     0   :  { %8 = vsyncpa [#allocation3], 0  ;;  %vm70_vm0 = vcmask 785408   ;;  %vm87_vm1 = vcmask 392192   ;;  %s218_s0 = inlined_call_operand.vmem [shape: f32[2,96], index: 0, kind: input, shape index: {}]   ;;  %s219_s1 = inlined_call_operand.vmem [shape: bf16[96,48], index: 1, kind: input, shape index: {}]   ;;  %s220_s2 = inlined_call_operand.vmem [shape: f32[1,48], index: 2, kind: input, shape index: {}]   ;;  %s221_s3 = inlined_call_operand.hbm [shape: f32[2,48], index: 3, kind: output, shape index: {}]  }
   0x1   :  { %v137_v0 = vld [vmem:[%s219_s1 + $0x28] sm:$0xff]  ;;  %v136_v1 = vld [vmem:[%s219_s1 + $0x20] sm:$0xff]  ;;  %v135_v2 = vld [vmem:[%s219_s1 + $0x18] sm:$0xff] }
   0x2   :  { %76 = vmatpush.bf16.msra.mxu0 %v137_v0  ;;  %v134_v3 = vld [vmem:[%s219_s1 + $0x10] sm:$0xff]  ;;  %v133_v4 = vld [vmem:[%s219_s1 + $0x8] sm:$0xff]  ;;  %v132_v5 = vld [vmem:[%s219_s1] sm:$0xff] }
   0x3   :  { %v16_v6 = vld [vmem:[%s218_s0] sm:$0xff] }
   0x4   :  { %v17_v7 = vpack.c.bf16 %v16_v6, %v16_v6  ;;  %v141_v8 = vld [vmem:[%s220_s2] ss:$0 sm:$0xff] }
   0x6   :  { %77 = vmatpush.bf16.msra.mxu0 %v136_v1 }
   0xa   :  { %78 = vmatpush.bf16.msra.mxu0 %v135_v2 }
   0xe   :  { %79 = vmatpush.bf16.msra.mxu0 %v134_v3 }
  0x12   :  { %80 = vmatpush.bf16.msra.mxu0 %v133_v4 }
  0x16   :  { %81 = vmatpush.bf16.msra.mxu0 %v132_v5 }
  0x19   :  { %131 = vmatmul.msk.bf16.vlgmr.msra.gmra.mxu0 %vm70_vm0, %v17_v7 }
  0x96   :  { %v83_v9 = vpop.f32.mrf.mxu0 }
  0x97   :  { %v84_v10 = vadd.f32 %v141_v8, %v83_v9 }
  0x99   :  { %88 = vst.msk [vmem:[#allocation2] sm:$0xff] %vm87_vm1, %v84_v10 }
  0x9e   :  { %v85_v11 = vpop.f32.mrf.mxu0 }
  0x9f   :  { %92 = vsyncadd [#allocation3], 96  ;;  %s95_s29 = sshll.u32 %s221_s3, 4  ;;  %s168_s30 = smov [#allocation2]   ;;  %s96_s29 = int_to_ptr.hbm [resolvable:$true] %s95_s29 }
  0xa0   :  { %s93_s0 = sshll.u32 %s168_s30, 4  ;;  %s169_s4 = smov 32   ;;  %s94_s0 = int_to_ptr.vmem [resolvable:$true] %s93_s0 }
  0xa1   :  { %s170_s5 = smov 2  }
  0xa2   :  { %101 = dma.vmem_to_hbm [thread:$0]  %s94_s0, 32, %s96_s29, [#allocation3], %s169_s4, %s169_s4, %s170_s5  }
  0xa3   :  { %166 = dma.done.wait [#allocation3], 128  }
  0xa4   :  { %167 = vsyncadd [#allocation3], 4294967168 }
  0xa5   :  { %106 = vsyncpa [#allocation3], 1 }

</bundles_post_ra>
